<compile_context>
chip_gen: v7x
topology: tpu7x:2x2x1
jax: 0.10.0
libtpu: 0.0.40
codegen_flags: <defaults>
</compile_context>

<pallas_src>
import jax
import jax.numpy as jnp
from jax.experimental import pallas as pl
from jax.experimental.pallas import tpu as pltpu


_LANES = 1024           # lane-dense slab width: multiple of 128 (8 vregs wide)
_MAX_BLOCK_ROWS = 512   # 512 * 1024 * 4 B = 2 MiB per f32 buffer (v5e-safe)


def _round_up(a, b):
    return (a + b - 1) // b * b


# ---------------------------------------------------------------------------
# Backward-path Pallas kernel: out = weight * g  (mem-bound elementwise scale)
# ---------------------------------------------------------------------------
def _scale_pallas(g, weight):
    """Compute weight * g via a tiled, lane-dense, double-buffered Pallas kernel."""
    orig_shape = g.shape
    dtype = g.dtype
    n = g.size
    if n == 0:
        return g

    # Flatten to a lane-dense 2-D slab, padding the tail explicitly so every
    # block is a full (8,128)-aligned tile (no masked partial stores).
    rows = -(-n // _LANES)                                # cdiv(n, _LANES)
    tm = min(_MAX_BLOCK_ROWS, _round_up(rows, 8))         # block rows, mult of 8
    m = _round_up(rows, tm)                               # padded slab rows
    padded_n = m * _LANES

    flat = g.reshape(-1)
    if padded_n != n:
        flat = jnp.pad(flat, (0, padded_n - n))
    slab = flat.reshape(m, _LANES)

    def scale_kernel(g_ref, o_ref):
        # Multiply in the native dtype; `weight` is a weakly-typed python scalar.
        o_ref[...] = g_ref[...] * weight

    out = pl.pallas_call(
        scale_kernel,
        out_shape=jax.ShapeDtypeStruct((m, _LANES), dtype),
        grid=(m // tm,),
        in_specs=[pl.BlockSpec((tm, _LANES), lambda i: (i, 0))],
        out_specs=pl.BlockSpec((tm, _LANES), lambda i: (i, 0)),
        # Write the scaled gradient in place over the incoming slab when XLA
        # can donate it -> no second gradient-sized HBM allocation.
        input_output_aliases={0: 0},
        compiler_params=pltpu.CompilerParams(
            dimension_semantics=("parallel",)),
    )(slab)

    return out.reshape(-1)[:n].reshape(orig_shape)


# ---------------------------------------------------------------------------
# GradientScalarLayer wrapper (custom VJP so backward matches PyTorch exactly)
# ---------------------------------------------------------------------------
def make_gradient_scalar_layer(weight):
    weight = float(weight)

    @jax.custom_vjp
    def gradient_scalar(x):
        # Forward is a pure view (PyTorch: input.view_as(input)) -> zero HBM traffic.
        return x

    def fwd(x):
        return x, None

    def bwd(_, g):
        return (_scale_pallas(g, weight),)

    gradient_scalar.defvjp(fwd, bwd)
    return gradient_scalar


class GradientScalarLayer:
    """JAX/Pallas port of the PyTorch GradientScalarLayer."""

    def __init__(self, weight):
        self.weight = weight
        self._fn = make_gradient_scalar_layer(weight)

    def __call__(self, x):
        return self._fn(x)

    def __repr__(self):
        return f"{self.__class__.__name__}(weight={self.weight})"


# ---------------------------------------------------------------------------
# Smoke test
# ---------------------------------------------------------------------------
if __name__ == "__main__":
    key = jax.random.PRNGKey(0)
    # NCHW input, small shapes consistent with a conv-feature-map consumer.
    x = jax.random.normal(key, (2, 4, 16, 16), dtype=jnp.float32)

    weight = -0.1  # fixed python-scalar "parameter", as in the PyTorch module
    layer = GradientScalarLayer(weight)

    # Forward: must be the identity (and is now a free pass-through).
    y = jax.block_until_ready(layer(x))
    assert y.shape == x.shape and y.dtype == x.dtype
    assert jnp.array_equal(y, x), "forward should be identity"

    # Exercise the Pallas backward kernel directly once.
    g = jnp.ones_like(x)
    scaled = jax.block_until_ready(_scale_pallas(g, weight))
    assert jnp.allclose(scaled, jnp.full_like(x, weight), atol=1e-6), \
        "scale kernel should multiply by weight"

    # Backward through autodiff: d/dx sum(layer(x)) == weight everywhere.
    grad_x = jax.block_until_ready(jax.grad(lambda a: jnp.sum(layer(a)))(x))
    assert grad_x.shape == x.shape and grad_x.dtype == x.dtype
    assert jnp.allclose(grad_x, jnp.full_like(x, weight), atol=1e-6), \
        "backward should scale the gradient by weight"

    # bf16 gradient path (native-dtype multiply inside the kernel).
    xb = x.astype(jnp.bfloat16)
    grad_b = jax.block_until_ready(jax.grad(lambda a: jnp.sum(layer(a)))(xb))
    assert grad_b.dtype == jnp.bfloat16
    assert jnp.allclose(grad_b.astype(jnp.float32),
                        jnp.full(x.shape, weight, dtype=jnp.float32), atol=1e-2)

    print("KERNEL_OK")
</pallas_src>

<mosaic_0001>
module attributes {stable_mosaic.version = 11 : i64} {
  func.func @scale_kernel(%arg0: i32, %arg1: memref<8x1024xf32, #tpu.memory_space<vmem>>, %arg2: memref<8x1024xf32, #tpu.memory_space<vmem>>) attributes {dimension_semantics = [#tpu.dimension_semantics<parallel>], iteration_bounds = array<i64: 1>, scalar_prefetch = 0 : i64, scratch_operands = 0 : i64, tpu.core_type = #tpu.core_type<tc>, window_params = [{transform_indices = @transform_0, window_bounds = array<i64: 8, 1024>}, {transform_indices = @transform_1, window_bounds = array<i64: 8, 1024>}]} {
    %c0 = arith.constant 0 : index
    %c0_0 = arith.constant 0 : index
    %0 = vector.load %arg1[%c0, %c0_0] : memref<8x1024xf32, #tpu.memory_space<vmem>>, vector<8x1024xf32>
    %cst = arith.constant -1.000000e-01 : f32
    %1 = vector.broadcast %cst : f32 to vector<8x1024xf32>
    %2 = arith.mulf %0, %1 : vector<8x1024xf32>
    %c0_1 = arith.constant 0 : index
    %c0_2 = arith.constant 0 : index
    %3 = vector.load %arg2[%c0_1, %c0_2] : memref<8x1024xf32, #tpu.memory_space<vmem>>, vector<8x1024xf32>
    tpu.vector_store %arg2[%c0_1, %c0_2], %2 {strides = array<i32>} : memref<8x1024xf32, #tpu.memory_space<vmem>>, vector<8x1024xf32>,
    return
  }
  func.func @transform_0(%arg0: i32) -> (i32, i32) {
    %c0_i32 = arith.constant 0 : i32
    %c0_i32_0 = arith.constant 0 : i32
    return %arg0, %c0_i32 : i32, i32
  }
  func.func @transform_1(%arg0: i32) -> (i32, i32) {
    %c0_i32 = arith.constant 0 : i32
    %c0_i32_0 = arith.constant 0 : i32
    return %arg0, %c0_i32 : i32, i32
  }
}

</mosaic_0001>

<bundles_post_ra>
// kernel: tpu_custom_call.1
= control target key start
LH: loop header
LB: loop body
LE: loop exit
PB: predicated region body
PF: predicated region fallthrough
CT: control target
= control target key end

     0   :  { %6 = vsyncpa [#allocation3], 0  ;;  %s146_s0 = inlined_call_operand.hbm [shape: f32[8,1024], index: 0, kind: input, shape index: {}, may-alias: {0,1}]   ;;  %s147_s1 = inlined_call_operand.hbm [shape: f32[8,1024], index: 1, kind: output, shape index: {}, may-alias: {0,1}]  }
   0x1   :  { %7 = vsyncpa [#allocation4], 0  ;;  %s110_s6 = smov [#allocation2]   ;;  %s62_s10 = scalar_lea.hbm %s146_s0, 1024 }
   0x2   :  { %s14_s7 = sshll.u32 %s110_s6, 4  ;;  %p63_p0 = scmp.ne.s32.totalorder %s146_s0, %s62_s10  ;;  %s15_s7 = int_to_ptr.vmem [resolvable:$true] %s14_s7 }
   0x3   :  { %p66_p1 = scmp.lt.u32.totalorder %s62_s10, %s146_s0 }
   0x5   :  { %p68_p2 = pnand %p66_p1, %p63_p0 }
   0x7   :  { %71 = shalt.err (!%p68_p2)
}
   0x8   :  { %s72_s15 = scalar_lea.vmem %s15_s7, 1024  ;;  %p77_p4 = scmp.lt.s32.totalorder %s15_s7, %s15_s7 }
   0x9   :  { %p73_p3 = scmp.ne.s32.totalorder %s15_s7, %s72_s15  ;;  %p78_p5 = scmp.lt.s32.totalorder %s72_s15, %s72_s15 }
   0xb   :  { %p79_p6 = por %p78_p5, %p77_p4 }
   0xd   :  { %p80_p7 = pnand %p79_p6, %p73_p3 }
   0xf   :  { %83 = shalt.err (!%p80_p7)
}
  0x10   :  { %17 = dma.hbm_to_vmem [thread:$0]  %s146_s0, 1024, %s15_s7, [#allocation3]  }
  0x11   :  { %106 = dma.done.wait [#allocation3], 1024  }
  0x12   :  { %107 = vsyncadd [#allocation3], 4294966272  ;;  %v21_v0 = vld [vmem:[#allocation2] sm:$0xff]  ;;  %v22_v1 = vld [vmem:[#allocation2 + $0x8] sm:$0xff]  ;;  %s111_s18 = smov [#allocation5]  }
  0x13   :  { %v23_v2 = vld [vmem:[#allocation2 + $0x10] sm:$0xff]  ;;  %v29_v3 = vmul.f32 -0.1, %v21_v0  ;;  %v30_v4 = vmul.f32 -0.1, %v22_v1  ;;  %v24_v6 = vld [vmem:[#allocation2 + $0x18] sm:$0xff] }
  0x14   :  { %v31_v5 = vmul.f32 -0.1, %v23_v2  ;;  %v25_v7 = vld [vmem:[#allocation2 + $0x20] sm:$0xff]  ;;  %v26_v8 = vld [vmem:[#allocation2 + $0x28] sm:$0xff]  ;;  %s51_s19 = sshll.u32 %s111_s18, 4  ;;  %v27_v12 = vld [vmem:[#allocation2 + $0x30] sm:$0xff]  ;;  %s52_s19 = int_to_ptr.vmem [resolvable:$true] %s51_s19 }
  0x15   :  { %37 = vst [vmem:[#allocation5] sm:$0xff] %v29_v3  ;;  %38 = vst [vmem:[#allocation5 + $0x8] sm:$0xff] %v30_v4  ;;  %v32_v9 = vmul.f32 -0.1, %v24_v6  ;;  %v33_v10 = vmul.f32 -0.1, %v25_v7  ;;  %p89_p9 = scmp.lt.s32.totalorder %s52_s19, %s52_s19 }
  0x16   :  { %39 = vst [vmem:[#allocation5 + $0x10] sm:$0xff] %v31_v5  ;;  %v34_v11 = vmul.f32 -0.1, %v26_v8  ;;  %v28_v13 = vld [vmem:[#allocation2 + $0x38] sm:$0xff]  ;;  %v35_v14 = vmul.f32 -0.1, %v27_v12 }
  0x17   :  { %40 = vst [vmem:[#allocation5 + $0x18] sm:$0xff] %v32_v9  ;;  %41 = vst [vmem:[#allocation5 + $0x20] sm:$0xff] %v33_v10  ;;  %v36_v15 = vmul.f32 -0.1, %v28_v13  ;;  %s84_s0 = scalar_lea.vmem %s52_s19, 1024 }
  0x18   :  { %42 = vst [vmem:[#allocation5 + $0x28] sm:$0xff] %v34_v11  ;;  %43 = vst [vmem:[#allocation5 + $0x30] sm:$0xff] %v35_v14  ;;  %p85_p8 = scmp.ne.s32.totalorder %s52_s19, %s84_s0  ;;  %p90_p10 = scmp.lt.s32.totalorder %s84_s0, %s84_s0 }
  0x19   :  { %44 = vst [vmem:[#allocation5 + $0x38] sm:$0xff] %v36_v15 }
  0x1a   :  { %p91_p11 = por %p90_p10, %p89_p9 }
  0x1c   :  { %p92_p12 = pnand %p91_p11, %p85_p8 }
  0x1e   :  { %95 = shalt.err (!%p92_p12)
}
  0x1f   :  { %s96_s22 = scalar_lea.hbm %s147_s1, 1024 }
  0x20   :  { %p97_p13 = scmp.ne.s32.totalorder %s147_s1, %s96_s22  ;;  %p100_p0 = scmp.lt.u32.totalorder %s96_s22, %s147_s1 }
  0x22   :  { %p102_p1 = pnand %p100_p0, %p97_p13 }
  0x24   :  { %105 = shalt.err (!%p102_p1)
}
  0x25   :  { %54 = dma.vmem_to_hbm [thread:$0]  %s52_s19, 1024, %s147_s1, [#allocation4]  }
  0x26   :  { %108 = dma.done.wait [#allocation4], 1024  }
  0x27   :  { %109 = vsyncadd [#allocation4], 4294966272 }
  0x28   :  { %58 = vsyncpa [#allocation3], 1 }
  0x29   :  { %59 = vsyncpa [#allocation4], 1 }

</bundles_post_ra>
